<compile_context>
chip_gen: v7x
topology: tpu7x:2x2x1
jax: 0.10.0
libtpu: 0.0.40
codegen_flags: <defaults>
</compile_context>

<pallas_src>
import functools

import jax
import jax.numpy as jnp
from jax import lax
from jax.experimental import pallas as pl
from jax.experimental.pallas import tpu as pltpu


def _round_up(v, m):
    return ((v + m - 1) // m) * m


def dng_kernel(x_ref, wt_ref, b_ref, out_ref, *, n_tasks):
    # x_ref  : (TB, N)     streamed input tile (f32 or bf16)
    # wt_ref : (N, Cpad)   bf16 grouped + zero-padded columns, VMEM-resident
    # b_ref  : (1, Cpad)   f32 bias, VMEM-resident
    # out_ref: (TB, Cpad)  bf16 lane-dense activated output
    t = n_tasks
    x = x_ref[...].astype(jnp.bfloat16)            # cast right before the MXU dot
    y = jnp.dot(x, wt_ref[...], preferred_element_type=jnp.float32)
    y = y + b_ref[...]                             # f32 bias broadcast over rows

    # One full-lane softplus pass (EUP), then row-invariant column selects (VPU).
    sp = jnp.logaddexp(y, 0.0)                     # softplus(y), numerically stable
    col = lax.broadcasted_iota(jnp.int32, (1, y.shape[-1]), 1)
    is_mu = col < t                                         # identity columns
    is_alpha = jnp.logical_and(col >= 2 * t, col < 3 * t)   # softplus + 1.0 columns
    out = jnp.where(is_mu, y, sp) + jnp.where(is_alpha, 1.0, 0.0)
    out_ref[...] = out.astype(out_ref.dtype)


def prepare_dng_params(W, b, n_out_tasks):
    """One-time (model-load) prep: permute interleaved PyTorch output units into
    contiguous [mu|nu|alpha|beta] groups, transpose, pad columns to 128, cast."""
    T = n_out_tasks
    n_out, n_in = W.shape
    assert n_out == 4 * T and b.shape == (4 * T,)
    # PyTorch forward reads interleaved columns 0::4 / 1::4 / 2::4 / 3::4, so
    # grouped column (group g, task t) corresponds to original unit 4*t + g.
    perm = jnp.array([4 * t + g for g in range(4) for t in range(T)], jnp.int32)
    Wp = W[perm]                                    # (4T, N) grouped rows
    bp = b[perm]                                    # (4T,)

    c_pad = _round_up(4 * T, 128)
    wt = jnp.zeros((n_in, c_pad), jnp.bfloat16)     # K = N (no N padding)
    wt = wt.at[:, :4 * T].set(Wp.T.astype(jnp.bfloat16))
    bias = jnp.zeros((1, c_pad), jnp.float32)
    bias = bias.at[0, :4 * T].set(bp.astype(jnp.float32))
    return wt, bias


def _pick_tile(rows, N, c_pad, x_bytes, out_bytes):
    """Batch tile from a VMEM budget; guarantee >=2 grid steps for v7x megacore."""
    budget = 32 << 20                         # conservative: fits v7x's 64 MiB TC
    resident = N * c_pad * 2 + c_pad * 4      # bf16 weights + f32 bias (1 buffer)
    per_row = 2 * (N * x_bytes + c_pad * out_bytes)   # double-buffered x + out
    tb = max(8, (budget - resident) // per_row)
    tb = min(tb, 2048, _round_up(rows, 8))
    if rows > 8:                              # >= 2 steps so both v7x TCs get work
        tb = min(tb, _round_up(pl.cdiv(rows, 2), 8))
    return int(max(8, (tb // 8) * 8))


def dense_normal_gamma(x, wt, bias, n_out_tasks):
    """x: (B, N_in) or (N_in,).  Returns f32 (4, B, T) (or (4, T) for 1-D input)."""
    T = n_out_tasks
    squeeze = x.ndim == 1
    if squeeze:
        x = x[None, :]
    B, N = x.shape
    n_w, c_pad = wt.shape
    assert N == n_w, (N, n_w)

    # Tiny batches only: pad rows up to one minimal 8-sublane tile.  Large
    # batches stream un-padded; the ragged last tile is masked by Pallas.
    if B < 8:
        x = jnp.pad(x, ((0, 8 - B), (0, 0)))
    rows = x.shape[0]

    x_bytes = x.dtype.itemsize                # f32 streamed directly, or bf16 upstream
    out_bytes = 2                             # bf16 lane-dense output slab
    tb = _pick_tile(rows, N, c_pad, x_bytes, out_bytes)
    steps = int(pl.cdiv(rows, tb))

    # 3-deep x pipeline when tiles are small and the grid is long enough for
    # per-step DMA-issue latency to be exposed (sweepable; default 2 otherwise).
    deep = steps >= 8 and tb * N * x_bytes <= (1 << 20)
    if deep:
        x_spec = pl.BlockSpec((tb, N), lambda i: (i, 0), pipeline_mode=pl.Buffered(3))
    else:
        x_spec = pl.BlockSpec((tb, N), lambda i: (i, 0))

    n_x_bufs = 3 if deep else 2
    footprint = (N * c_pad * 2 + c_pad * 4
                 + n_x_bufs * tb * N * x_bytes
                 + 2 * tb * c_pad * out_bytes)
    vmem_limit = int(min(40 << 20, max(16 << 20, 2 * footprint)))

    cost = pl.CostEstimate(
        flops=2 * rows * N * c_pad,
        transcendentals=2 * rows * c_pad,
        bytes_accessed=rows * N * x_bytes + N * c_pad * 2 + rows * c_pad * out_bytes,
    )

    out = pl.pallas_call(
        functools.partial(dng_kernel, n_tasks=T),
        out_shape=jax.ShapeDtypeStruct((rows, c_pad), jnp.bfloat16),
        grid=(steps,),
        in_specs=[
            x_spec,                                           # streamed x tiles
            pl.BlockSpec((N, c_pad), lambda i: (0, 0)),       # resident weights
            pl.BlockSpec((1, c_pad), lambda i: (0, 0)),       # resident bias
        ],
        out_specs=pl.BlockSpec((tb, c_pad), lambda i: (i, 0)),
        compiler_params=pltpu.CompilerParams(
            dimension_semantics=("parallel",),   # shard batch grid across TCs
            vmem_limit_bytes=vmem_limit,
        ),
        cost_estimate=cost,
    )(x, wt, bias)

    y = out[:B, :4 * T].astype(jnp.float32)           # drop row/lane padding
    y = y.reshape(B, 4, T).transpose(1, 0, 2)          # (4, B, T)
    return y[:, 0, :] if squeeze else y


if __name__ == "__main__":
    N_IN, N_TASKS = 32, 2                     # n_out = 4 * N_TASKS = 8

    key = jax.random.PRNGKey(0)
    kx, kw, kb, kx2 = jax.random.split(key, 4)

    # Deterministic nn.Linear-style init: U(-1/sqrt(n_in), 1/sqrt(n_in)).
    bound = 1.0 / (N_IN ** 0.5)
    W = jax.random.uniform(kw, (4 * N_TASKS, N_IN), jnp.float32, -bound, bound)
    b = jax.random.uniform(kb, (4 * N_TASKS,), jnp.float32, -bound, bound)

    wt, bias = prepare_dng_params(W, b, N_TASKS)      # hoisted, one-time prep

    def reference(xx):
        y = xx @ W.T + b
        mu, lognu, logalpha, logbeta = y[:, 0::4], y[:, 1::4], y[:, 2::4], y[:, 3::4]
        return jnp.stack([mu,
                          jax.nn.softplus(lognu),
                          jax.nn.softplus(logalpha) + 1.0,
                          jax.nn.softplus(logbeta)])

    # --- small batch -------------------------------------------------------
    B = 8
    x = jax.random.normal(kx, (B, N_IN), jnp.float32)
    out = jax.block_until_ready(dense_normal_gamma(x, wt, bias, N_TASKS))
    assert out.shape == (4, B, N_TASKS), out.shape
    # vs f32 reference (bf16 matmul inputs + bf16 output store -> loose tol).
    assert jnp.allclose(out, reference(x), atol=5e-2, rtol=5e-2), "mismatch vs f32 ref"
    # vs a bf16-matmul-matched reference (only output bf16 rounding remains).
    y16 = jnp.dot(x.astype(jnp.bfloat16), W.T.astype(jnp.bfloat16),
                  preferred_element_type=jnp.float32) + b
    ref16 = jnp.stack([y16[:, 0::4],
                       jax.nn.softplus(y16[:, 1::4]),
                       jax.nn.softplus(y16[:, 2::4]) + 1.0,
                       jax.nn.softplus(y16[:, 3::4])])
    assert jnp.allclose(out, ref16, atol=2e-2, rtol=2e-2), "mismatch vs bf16 ref"

    # --- larger ragged batch: multi-step "parallel" grid, masked last tile --
    B2 = 300
    x2 = jax.random.normal(kx2, (B2, N_IN), jnp.float32)
    out2 = jax.block_until_ready(dense_normal_gamma(x2, wt, bias, N_TASKS))
    assert out2.shape == (4, B2, N_TASKS), out2.shape
    assert jnp.allclose(out2, reference(x2), atol=5e-2, rtol=5e-2), "mismatch (ragged)"

    # --- 1-D (unbatched) PyTorch path ---------------------------------------
    out1d = jax.block_until_ready(dense_normal_gamma(x[0], wt, bias, N_TASKS))
    assert out1d.shape == (4, N_TASKS), out1d.shape
    assert jnp.allclose(out1d, out[:, 0, :], atol=1e-3, rtol=1e-3)

    print("KERNEL_OK")
</pallas_src>

<mosaic_0001>
module attributes {stable_mosaic.version = 11 : i64} {
  func.func @dng_kernel(%arg0: i32, %arg1: memref<8x32xf32, #tpu.memory_space<vmem>>, %arg2: memref<32x128xbf16, #tpu.memory_space<vmem>>, %arg3: memref<1x128xf32, #tpu.memory_space<vmem>>, %arg4: memref<8x128xbf16, #tpu.memory_space<vmem>>) attributes {dimension_semantics = [#tpu.dimension_semantics<parallel>], iteration_bounds = array<i64: 1>, scalar_prefetch = 0 : i64, scratch_operands = 0 : i64, tpu.core_type = #tpu.core_type<tc>, window_params = [{transform_indices = @transform_0, window_bounds = array<i64: 8, 32>}, {pipeline_mode = #tpu.pipeline_mode<synchronous>, transform_indices = @transform_1, window_bounds = array<i64: 32, 128>}, {pipeline_mode = #tpu.pipeline_mode<synchronous>, transform_indices = @transform_2, window_bounds = array<i64: 1, 128>}, {transform_indices = @transform_3, window_bounds = array<i64: 8, 128>}]} {
    %c0 = arith.constant 0 : index
    %c0_0 = arith.constant 0 : index
    %0 = vector.load %arg1[%c0, %c0_0] : memref<8x32xf32, #tpu.memory_space<vmem>>, vector<8x32xf32>
    %1 = arith.truncf %0 : vector<8x32xf32> to vector<8x32xbf16>
    %c0_1 = arith.constant 0 : index
    %c0_2 = arith.constant 0 : index
    %2 = vector.load %arg2[%c0_1, %c0_2] : memref<32x128xbf16, #tpu.memory_space<vmem>>, vector<32x128xbf16>
    %cst = arith.constant dense<0.000000e+00> : vector<8x128xf32>
    %3 = tpu.matmul %1, %2, %cst {dimension_numbers = #tpu.dot_dimension_numbers<[1], [0], [0], [1], [0, 0, 1, 1], [], []>} : vector<8x32xbf16>, vector<32x128xbf16>, vector<8x128xf32> -> vector<8x128xf32>
    %c0_3 = arith.constant 0 : index
    %c0_4 = arith.constant 0 : index
    %4 = vector.load %arg3[%c0_3, %c0_4] : memref<1x128xf32, #tpu.memory_space<vmem>>, vector<1x128xf32>
    %5 = vector.broadcast %4 : vector<1x128xf32> to vector<8x128xf32>
    %6 = arith.addf %3, %5 : vector<8x128xf32>
    %cst_5 = arith.constant 0.000000e+00 : f32
    %7 = vector.broadcast %cst_5 : f32 to vector<8x128xf32>
    %8 = arith.maximumf %6, %7 : vector<8x128xf32>
    %9 = vector.broadcast %cst_5 : f32 to vector<8x128xf32>
    %10 = arith.subf %6, %9 : vector<8x128xf32>
    %11 = arith.cmpf one, %10, %10 : vector<8x128xf32>
    %12 = vector.broadcast %cst_5 : f32 to vector<8x128xf32>
    %13 = arith.addf %6, %12 : vector<8x128xf32>
    %14 = math.absf %10 : vector<8x128xf32>
    %cst_6 = arith.constant 0.000000e+00 : f32
    %15 = vector.broadcast %cst_6 : f32 to vector<8x128xf32>
    %16 = arith.subf %15, %14 : vector<8x128xf32>
    %17 = math.exp %16 : vector<8x128xf32>
    %18 = math.log1p %17 : vector<8x128xf32>
    %19 = arith.addf %8, %18 : vector<8x128xf32>
    %20 = arith.select %11, %13, %19 : vector<8x128xi1>, vector<8x128xf32>
    %21 = tpu.iota {dimensions = array<i32: 1>} : vector<1x128xi32>
    %c2_i32 = arith.constant 2 : i32
    %22 = vector.broadcast %c2_i32 : i32 to vector<1x128xi32>
    %23 = arith.cmpi slt, %21, %22 : vector<1x128xi32>
    %c4_i32 = arith.constant 4 : i32
    %24 = vector.broadcast %c4_i32 : i32 to vector<1x128xi32>
    %25 = arith.cmpi sge, %21, %24 : vector<1x128xi32>
    %c6_i32 = arith.constant 6 : i32
    %26 = vector.broadcast %c6_i32 : i32 to vector<1x128xi32>
    %27 = arith.cmpi slt, %21, %26 : vector<1x128xi32>
    %28 = arith.andi %25, %27 : vector<1x128xi1>
    %29 = vector.shape_cast %23 : vector<1x128xi1> to vector<1x128xi1>
    %30 = vector.broadcast %29 : vector<1x128xi1> to vector<8x128xi1>
    %31 = arith.select %30, %6, %20 : vector<8x128xi1>, vector<8x128xf32>
    %cst_7 = arith.constant 1.000000e+00 : f32
    %cst_8 = arith.constant 0.000000e+00 : f32
    %32 = vector.broadcast %cst_7 : f32 to vector<1x128xf32>
    %33 = vector.broadcast %cst_8 : f32 to vector<1x128xf32>
    %34 = arith.select %28, %32, %33 : vector<1x128xi1>, vector<1x128xf32>
    %35 = vector.broadcast %34 : vector<1x128xf32> to vector<8x128xf32>
    %36 = arith.addf %31, %35 : vector<8x128xf32>
    %37 = arith.truncf %36 : vector<8x128xf32> to vector<8x128xbf16>
    %c0_9 = arith.constant 0 : index
    %c0_10 = arith.constant 0 : index
    %38 = vector.load %arg4[%c0_9, %c0_10] : memref<8x128xbf16, #tpu.memory_space<vmem>>, vector<8x128xbf16>
    tpu.vector_store %arg4[%c0_9, %c0_10], %37 {strides = array<i32>} : memref<8x128xbf16, #tpu.memory_space<vmem>>, vector<8x128xbf16>,
    return
  }
  func.func @transform_0(%arg0: i32) -> (i32, i32) {
    %c0_i32 = arith.constant 0 : i32
    %c0_i32_0 = arith.constant 0 : i32
    return %arg0, %c0_i32 : i32, i32
  }
  func.func @transform_1(%arg0: i32) -> (i32, i32) {
    %c0_i32 = arith.constant 0 : i32
    %c0_i32_0 = arith.constant 0 : i32
    %c0_i32_1 = arith.constant 0 : i32
    return %c0_i32, %c0_i32_0 : i32, i32
  }
  func.func @transform_2(%arg0: i32) -> (i32, i32) {
    %c0_i32 = arith.constant 0 : i32
    %c0_i32_0 = arith.constant 0 : i32
    %c0_i32_1 = arith.constant 0 : i32
    return %c0_i32, %c0_i32_0 : i32, i32
  }
  func.func @transform_3(%arg0: i32) -> (i32, i32) {
    %c0_i32 = arith.constant 0 : i32
    %c0_i32_0 = arith.constant 0 : i32
    return %arg0, %c0_i32 : i32, i32
  }
}

</mosaic_0001>

<bundles_post_ra>
// kernel: tpu_custom_call.1
= control target key start
LH: loop header
LB: loop body
LE: loop exit
PB: predicated region body
PF: predicated region fallthrough
CT: control target
= control target key end

     0   :  { %8 = vsyncpa [#allocation3], 0  ;;  %s331_s0 = inlined_call_operand.hbm [shape: f32[8,32], index: 0, kind: input, shape index: {}]   ;;  %s332_s1 = inlined_call_operand.hbm [shape: bf16[32,128], index: 1, kind: input, shape index: {}]   ;;  %s333_s2 = inlined_call_operand.vmem [shape: f32[1,128], index: 2, kind: input, shape index: {}]   ;;  %s334_s3 = inlined_call_operand.hbm [shape: bf16[8,128], index: 3, kind: output, shape index: {}]  }
   0x1   :  { %9 = vsyncpa [#allocation6], 0 }
   0x2   :  { %10 = vsyncpa [#allocation4], 0  ;;  %s258_s12 = smov [#allocation2]   ;;  %s259_s14 = smov [#allocation5]  }
   0x3   :  { %s17_s13 = sshll.u32 %s258_s12, 4  ;;  %s26_s15 = sshll.u32 %s259_s14, 4  ;;  %s18_s13 = int_to_ptr.vmem [resolvable:$true] %s17_s13  ;;  %s285_s15 = int_to_ptr.vmem [resolvable:$true] %s26_s15 }
   0x4   :  { %s186_s18 = scalar_lea.hbm %s331_s0, 128 }
   0x5   :  { %p187_p0 = scmp.ne.s32.totalorder %s331_s0, %s186_s18  ;;  %p190_p1 = scmp.lt.u32.totalorder %s186_s18, %s331_s0 }
   0x7   :  { %p192_p2 = pnand %p190_p1, %p187_p0 }
   0x9   :  { %195 = shalt.err (!%p192_p2)
}
   0xa   :  { %s196_s23 = scalar_lea.vmem %s18_s13, 128  ;;  %p201_p4 = scmp.lt.s32.totalorder %s18_s13, %s18_s13 }
   0xb   :  { %p197_p3 = scmp.ne.s32.totalorder %s18_s13, %s196_s23  ;;  %p202_p5 = scmp.lt.s32.totalorder %s196_s23, %s196_s23 }
   0xd   :  { %p203_p6 = por %p202_p5, %p201_p4 }
   0xf   :  { %p204_p7 = pnand %p203_p6, %p197_p3 }
  0x11   :  { %207 = shalt.err (!%p204_p7)
}
  0x12   :  { %20 = dma.hbm_to_vmem [thread:$0]  %s331_s0, 128, %s18_s13, [#allocation3]  }
  0x13   :  { %s208_s28 = scalar_lea.hbm %s332_s1, 256 }
  0x14   :  { %p209_p8 = scmp.ne.s32.totalorder %s332_s1, %s208_s28  ;;  %p212_p9 = scmp.lt.u32.totalorder %s208_s28, %s332_s1 }
  0x16   :  { %p214_p10 = pnand %p212_p9, %p209_p8 }
  0x18   :  { %217 = shalt.err (!%p214_p10)
}
  0x19   :  { %s218_s6 = scalar_lea.vmem %s285_s15, 256  ;;  %p223_p12 = scmp.lt.s32.totalorder %s285_s15, %s285_s15 }
  0x1a   :  { %p219_p11 = scmp.ne.s32.totalorder %s285_s15, %s218_s6  ;;  %p224_p13 = scmp.lt.s32.totalorder %s218_s6, %s218_s6 }
  0x1c   :  { %p225_p0 = por %p224_p13, %p223_p12 }
  0x1e   :  { %p226_p1 = pnand %p225_p0, %p219_p11 }
  0x20   :  { %229 = shalt.err (!%p226_p1)
}
  0x21   :  { %s260_s0 = smov 64   ;;  %s261_s7 = smov 4  }
  0x22   :  { %32 = dma.hbm_to_vmem [thread:$0]  %s332_s1, 256, %s285_s15, [#allocation6], %s260_s0, %s260_s0, %s261_s7  }
  0x23   :  { %252 = dma.done.wait [#allocation3], 128  }
  0x24   :  { %253 = vsyncadd [#allocation3], 4294967168 }
  0x25   :  { %254 = dma.done.wait [#allocation6], 256  }
  0x26   :  { %255 = vsyncadd [#allocation6], 4294967040  ;;  %v262_v0 = vmov 0.0   ;;  %vm263_vm0 = vmmov 0   ;;  %v180_v1 = vld [vmem:[#allocation5] sm:$0xff]   ;;  %v181_v2 = vld [vmem:[#allocation5 + $0x8] sm:$0xff]   ;;  %v129_v16 = vlaneseq }
  0x27   :  { %165 = vmatprep.subr.bf16.mxu0 %v262_v0  ;;  %169 = vmatprep.mubr.msk.bf16.mxu0 %vm263_vm0, %v262_v0  ;;  %v42_v3 = vld [vmem:[#allocation2] sm:$0xff]  ;;  %vm67_vm1 = vcmask 261120   ;;  %s264_s1 = smov [#allocation7]  }
  0x28   :  { %166 = vmatpush3.bf16.msra.mxu0 %v180_v1  ;;  %v43_v4 = vpack.c.bf16 %v42_v3, %v42_v3  ;;  %v158_v5 = vld [vmem:[%s333_s2] ss:$0 sm:$0xff]  ;;  %v130_v18 = vand.u32 127, %v129_v16  ;;  %s148_s2 = sshll.u32 %s264_s1, 4  ;;  %s149_s2 = int_to_ptr.vmem [resolvable:$true] %s148_s2 }
  0x29   :  { %167 = vmatprep.subr.bf16.mxu0 %v262_v0  ;;  %s230_s12 = scalar_lea.vmem %s149_s2, 64  ;;  %p235_p3 = scmp.lt.s32.totalorder %s149_s2, %s149_s2 }
  0x2a   :  { %vm132_vm2 = vcmp.ge.s32.totalorder %v130_v18, 4  ;;  %vm133_vm3 = vcmp.lt.s32.totalorder %v130_v18, 6  ;;  %vm131_vm6 = vcmp.lt.s32.totalorder %v130_v18, 2  ;;  %p231_p2 = scmp.ne.s32.totalorder %s149_s2, %s230_s12  ;;  %p236_p4 = scmp.lt.s32.totalorder %s230_s12, %s230_s12 }
  0x2b   :  { %vm134_vm5 = vmand %vm132_vm2, %vm133_vm3 }
  0x2c   :  { %168 = vmatpush3.bf16.msra.mxu0 %v181_v2  ;;  %v138_v27 = vsel %vm134_vm5, 1.0, %v262_v0  ;;  %p237_p5 = por %p236_p4, %p235_p3 }
  0x2e   :  { %p238_p6 = pnand %p237_p5, %p231_p2 }
  0x2f   :  { %170 = vmatmul.mubr.msk.bf16.vlgmr.msra.gmra.mrb[0].mxu0 %vm67_vm1, %v43_v4 }
 0x102   :  { %v105_v6 = vpop.f32.mrb[0].mxu0 }
 0x103   :  { %v106_v7 = vadd.f32 %v158_v5, %v105_v6  ;;  %v171_v8 = vpop.f32.mrb[1].mxu0 }
 0x104   :  { %v108_v9 = vpop.f32.mrb[2].mxu0 }
 0x105   :  { %v114_v10 = vand.u32 2147483647, %v106_v7  ;;  %v172_v11 = vpop.f32.mrb[3].mxu0  ;;  %v111_v24 = vmax.f32 %v106_v7, 0.0  ;;  %vm112_vm7 = vcmp.ne.f32.partialorder %v106_v7, %v106_v7 }
 0x107   :  { %v115_v12 = vsub.f32 0.0, %v114_v10 }
 0x109   :  { %v116_v13 = vmul.f32 1.442695, %v115_v12 }
 0x10b   :  { %182 = vpow2.f32 %v116_v13 }
 0x115   :  { %v183_v14 = vpop.eup %182 }
 0x116   :  { %v118_v15 = vadd.f32 1.0, %v183_v14  ;;  %v121_v17 = vmul.f32 -0.5, %v183_v14  ;;  %v124_v20 = vand.u32 2147483647, %v183_v14 }
 0x118   :  { %184 = vlog2.f32 %v118_v15  ;;  %v122_v19 = vadd.f32 1.0, %v121_v17  ;;  %vm125_vm4 = vcmp.lt.f32.partialorder %v124_v20, 0.0004427343 }
 0x11a   :  { %v123_v23 = vmul.f32 %v183_v14, %v122_v19 }
 0x122   :  { %v185_v21 = vpop.eup %184 }
 0x123   :  { %v120_v22 = vmul.f32 0.6931472, %v185_v21 }
 0x125   :  { %v126_v25 = vsel %vm125_vm4, %v123_v23, %v120_v22 }
 0x126   :  { %v127_v26 = vadd.f32 %v126_v25, %v111_v24 }
 0x128   :  { %v128_v28 = vsel %vm112_vm7, %v106_v7, %v127_v26 }
 0x129   :  { %v137_v29 = vsel %vm131_vm6, %v106_v7, %v128_v28 }
 0x12a   :  { %v139_v30 = vadd.f32 %v138_v27, %v137_v29 }
 0x12c   :  { %v140_v31 = vpack.c.bf16 %v139_v30, %v139_v30 }
 0x12e   :  { %141 = vst [vmem:[#allocation7] sm:$0xf] %v140_v31 }
 0x12f   :  { %241 = shalt.err (!%p238_p6)
}
 0x130   :  { %s242_s15 = scalar_lea.hbm %s334_s3, 64 }
 0x131   :  { %p243_p7 = scmp.ne.s32.totalorder %s334_s3, %s242_s15  ;;  %p246_p8 = scmp.lt.u32.totalorder %s242_s15, %s334_s3 }
 0x133   :  { %p248_p9 = pnand %p246_p8, %p243_p7 }
 0x135   :  { %251 = shalt.err (!%p248_p9)
}
 0x136   :  { %151 = dma.vmem_to_hbm [thread:$0]  %s149_s2, 64, %s334_s3, [#allocation4]  }
 0x137   :  { %256 = dma.done.wait [#allocation4], 64  }
 0x138   :  { %257 = vsyncadd [#allocation4], 4294967232 }
 0x139   :  { %155 = vsyncpa [#allocation3], 1 }
 0x13a   :  { %156 = vsyncpa [#allocation6], 1 }
 0x13b   :  { %157 = vsyncpa [#allocation4], 1 }

</bundles_post_ra>
